<compile_context>
chip_gen: v7x
topology: tpu7x:2x2x1
jax: 0.10.0
libtpu: 0.0.40
codegen_flags: <defaults>
</compile_context>

<pallas_src>
import jax
import jax.numpy as jnp
from jax.experimental import pallas as pl
from jax.experimental.pallas import tpu as pltpu


def _q_mlp_kernel(x_ref, w1_ref, w2_ref, misc_ref, o_ref):
    # misc columns: 0 = b1, 1 = b2, 2 = w3 (column), 3 = b3 (broadcast copy).
    b1 = misc_ref[:, 0:1]     # (H, 1), broadcasts across batch lanes
    b2 = misc_ref[:, 1:2]     # (H, 1)
    w3 = misc_ref[:, 2:3]     # (H, 1)
    b3 = misc_ref[0:1, 3:4]   # (1, 1)

    x = x_ref[...]
    if x.dtype != w1_ref.dtype:          # static dtype check (bf16 transfer)
        x = x.astype(w1_ref.dtype)

    # Layer 1: (H, D_in) @ (D_in, tb) + b1 -> ReLU        (batch on MXU N / lanes)
    h1 = jnp.dot(w1_ref[...], x, preferred_element_type=jnp.float32) + b1
    h1 = jnp.maximum(h1, 0.0)

    # Layer 2: (H, H) @ (H, tb) + b2 -> ReLU
    h2 = jnp.dot(w2_ref[...], h1, preferred_element_type=jnp.float32) + b2
    h2 = jnp.maximum(h2, 0.0)

    # Layer 3 (H -> 1): VPU multiply + XLU sublane reduction, lane-dense (1, tb).
    q = jnp.sum(h2 * w3, axis=0, keepdims=True) + b3
    o_ref[...] = q.astype(o_ref.dtype)


def pack_params(w1, b1, w2, b2, w3, b3):
    """One-time parameter preprocessing (outside the hot path).

    w1: (obs+act, H), b1: (1, H), w2: (H, H), b2: (1, H), w3: (H, 1), b3: (1, 1)
    Returns (w1_fm, w2_fm, misc):
      w1_fm = w1.T (H, obs+act), w2_fm = w2.T (H, H),
      misc  = (H, 4) with columns [b1, b2, w3, b3 broadcast].
    """
    hidden = w2.shape[0]
    misc = jnp.stack(
        [
            b1.reshape(hidden),
            b2.reshape(hidden),
            w3.reshape(hidden),
            jnp.full((hidden,), b3.reshape(()), jnp.float32),
        ],
        axis=1,
    )
    return w1.T, w2.T, misc.astype(jnp.float32)


def _round_up(x, m):
    return ((x + m - 1) // m) * m


def q_network_forward(state, action, packed_params, *, batch_tile=2048,
                      transfer_dtype=None):
    """state: [B, obs], action: [B, act] -> q: [B, 1]."""
    w1_fm, w2_fm, misc = packed_params
    B = state.shape[0]
    d_in = w1_fm.shape[1]
    assert d_in == state.shape[1] + action.shape[1]

    # Feature-major input slab (D_in, B).  One small fused concat+transpose in
    # the wrapper; a caller that stores its replay buffer feature-major makes
    # this a no-op.
    x_fm = jnp.concatenate([state, action], axis=-1).T
    if transfer_dtype is not None:
        x_fm = x_fm.astype(transfer_dtype)   # e.g. bf16: halves input HBM traffic

    # Batch tile on the lane axis: full batch if small; otherwise a multiple of
    # 128 capped at batch_tile, with >= 2 grid steps so v7x's two TensorCores
    # both get work.  Ragged last tile is fine: lanes are independent and the
    # output writeback is masked (no cross-batch reduction in-kernel).
    if B <= 256:
        tb = B
    else:
        tb = min(batch_tile, _round_up(pl.cdiv(B, 2), 128))
    grid = (pl.cdiv(B, tb),)

    # Weights / packed biases: constant block index -> resident in VMEM, no
    # re-DMA across batch grid steps.
    const = lambda a: pl.BlockSpec(a.shape, lambda i: (0,) * a.ndim)

    q_fm = pl.pallas_call(
        _q_mlp_kernel,
        out_shape=jax.ShapeDtypeStruct((1, B), jnp.float32),
        grid=grid,
        in_specs=[
            pl.BlockSpec((d_in, tb), lambda i: (0, i)),   # x, batch on lanes
            const(w1_fm),
            const(w2_fm),
            const(misc),
        ],
        out_specs=pl.BlockSpec((1, tb), lambda i: (0, i)),  # lane-dense q row
        compiler_params=pltpu.CompilerParams(dimension_semantics=("parallel",)),
    )(x_fm, w1_fm, w2_fm, misc)

    return q_fm.reshape(B, 1)


def init_params(key, obs_dim, act_dim, hidden):
    """Deterministic synthetic init (uniform, roughly matching torch Linear scale)."""
    d_in = obs_dim + act_dim
    ks = jax.random.split(key, 6)

    def lin(kw, kb, fan_in, fan_out):
        bound = 1.0 / jnp.sqrt(fan_in)
        w = jax.random.uniform(kw, (fan_in, fan_out), jnp.float32, -bound, bound)
        b = jax.random.uniform(kb, (1, fan_out), jnp.float32, -bound, bound)
        return w, b

    w1, b1 = lin(ks[0], ks[1], d_in, hidden)
    w2, b2 = lin(ks[2], ks[3], hidden, hidden)
    w3, b3 = lin(ks[4], ks[5], hidden, 1)
    return (w1, b1, w2, b2, w3, b3)


if __name__ == "__main__":
    # Small shapes consistent with a Walker2d-style env: obs=17, action=6,
    # hidden=32, batch=8.
    OBS, ACT, HIDDEN, BATCH = 17, 6, 32, 8

    key = jax.random.PRNGKey(0)
    k_s, k_a, k_p = jax.random.split(key, 3)
    state = jax.random.normal(k_s, (BATCH, OBS), jnp.float32)
    action = jax.random.normal(k_a, (BATCH, ACT), jnp.float32)

    raw_params = init_params(k_p, OBS, ACT, HIDDEN)
    packed = pack_params(*raw_params)

    q = q_network_forward(state, action, packed)
    q = jax.block_until_ready(q)

    # Reference check in plain JAX (same math, same params, batch-major).
    w1, b1, w2, b2, w3, b3 = raw_params
    x = jnp.concatenate([state, action], axis=-1)
    h1 = jnp.maximum(x @ w1 + b1, 0.0)
    h2 = jnp.maximum(h1 @ w2 + b2, 0.0)
    q_ref = h2 @ w3 + b3

    assert q.shape == (BATCH, 1), q.shape
    err = float(jnp.max(jnp.abs(q - q_ref)))
    # Default MXU precision (bf16 pass) -> loose-but-meaningful tolerance.
    assert jnp.allclose(q, q_ref, atol=1e-3, rtol=1e-3), err
    print("KERNEL_OK")
</pallas_src>

<mosaic_0001>
module attributes {stable_mosaic.version = 11 : i64} {
  func.func @_q_mlp_kernel(%arg0: i32, %arg1: memref<23x8xf32, #tpu.memory_space<vmem>>, %arg2: memref<32x23xf32, #tpu.memory_space<vmem>>, %arg3: memref<32x32xf32, #tpu.memory_space<vmem>>, %arg4: memref<32x4xf32, #tpu.memory_space<vmem>>, %arg5: memref<1x8xf32, #tpu.memory_space<vmem>>) attributes {dimension_semantics = [#tpu.dimension_semantics<parallel>], iteration_bounds = array<i64: 1>, scalar_prefetch = 0 : i64, scratch_operands = 0 : i64, tpu.core_type = #tpu.core_type<tc>, window_params = [{transform_indices = @transform_0, window_bounds = array<i64: 23, 8>}, {pipeline_mode = #tpu.pipeline_mode<synchronous>, transform_indices = @transform_1, window_bounds = array<i64: 32, 23>}, {pipeline_mode = #tpu.pipeline_mode<synchronous>, transform_indices = @transform_2, window_bounds = array<i64: 32, 32>}, {pipeline_mode = #tpu.pipeline_mode<synchronous>, transform_indices = @transform_3, window_bounds = array<i64: 32, 4>}, {transform_indices = @transform_4, window_bounds = array<i64: 1, 8>}]} {
    %c0 = arith.constant 0 : index
    %c0_0 = arith.constant 0 : index
    %0 = vector.load %arg4[%c0, %c0_0] : memref<32x4xf32, #tpu.memory_space<vmem>>, vector<32x1xf32>
    %c0_1 = arith.constant 0 : index
    %c1 = arith.constant 1 : index
    %1 = vector.load %arg4[%c0_1, %c1] : memref<32x4xf32, #tpu.memory_space<vmem>>, vector<32x1xf32>
    %c0_2 = arith.constant 0 : index
    %c2 = arith.constant 2 : index
    %2 = vector.load %arg4[%c0_2, %c2] : memref<32x4xf32, #tpu.memory_space<vmem>>, vector<32x1xf32>
    %c0_3 = arith.constant 0 : index
    %c3 = arith.constant 3 : index
    %3 = vector.load %arg4[%c0_3, %c3] : memref<32x4xf32, #tpu.memory_space<vmem>>, vector<1x1xf32>
    %c0_4 = arith.constant 0 : index
    %c0_5 = arith.constant 0 : index
    %4 = vector.load %arg1[%c0_4, %c0_5] : memref<23x8xf32, #tpu.memory_space<vmem>>, vector<23x8xf32>
    %c0_6 = arith.constant 0 : index
    %c0_7 = arith.constant 0 : index
    %5 = vector.load %arg2[%c0_6, %c0_7] : memref<32x23xf32, #tpu.memory_space<vmem>>, vector<32x23xf32>
    %cst = arith.constant dense<0.000000e+00> : vector<32x8xf32>
    %6 = tpu.matmul %5, %4, %cst {dimension_numbers = #tpu.dot_dimension_numbers<[1], [0], [0], [1], [0, 0, 1, 1], [], []>} : vector<32x23xf32>, vector<23x8xf32>, vector<32x8xf32> -> vector<32x8xf32>
    %7 = vector.broadcast %0 : vector<32x1xf32> to vector<32x8xf32>
    %8 = arith.addf %6, %7 : vector<32x8xf32>
    %cst_8 = arith.constant 0.000000e+00 : f32
    %9 = vector.broadcast %cst_8 : f32 to vector<32x8xf32>
    %10 = arith.maximumf %8, %9 : vector<32x8xf32>
    %c0_9 = arith.constant 0 : index
    %c0_10 = arith.constant 0 : index
    %11 = vector.load %arg3[%c0_9, %c0_10] : memref<32x32xf32, #tpu.memory_space<vmem>>, vector<32x32xf32>
    %cst_11 = arith.constant dense<0.000000e+00> : vector<32x8xf32>
    %12 = tpu.matmul %11, %10, %cst_11 {dimension_numbers = #tpu.dot_dimension_numbers<[1], [0], [0], [1], [0, 0, 1, 1], [], []>} : vector<32x32xf32>, vector<32x8xf32>, vector<32x8xf32> -> vector<32x8xf32>
    %13 = vector.broadcast %1 : vector<32x1xf32> to vector<32x8xf32>
    %14 = arith.addf %12, %13 : vector<32x8xf32>
    %cst_12 = arith.constant 0.000000e+00 : f32
    %15 = vector.broadcast %cst_12 : f32 to vector<32x8xf32>
    %16 = arith.maximumf %14, %15 : vector<32x8xf32>
    %17 = vector.broadcast %2 : vector<32x1xf32> to vector<32x8xf32>
    %18 = arith.mulf %16, %17 : vector<32x8xf32>
    %cst_13 = arith.constant dense<0.000000e+00> : vector<8xf32>
    %19 = vector.multi_reduction <add>, %18, %cst_13 [0] : vector<32x8xf32> to vector<8xf32>
    %20 = vector.shape_cast %19 : vector<8xf32> to vector<1x8xf32>
    %21 = vector.broadcast %3 : vector<1x1xf32> to vector<1x8xf32>
    %22 = arith.addf %20, %21 : vector<1x8xf32>
    %c0_14 = arith.constant 0 : index
    %c0_15 = arith.constant 0 : index
    %23 = vector.load %arg5[%c0_14, %c0_15] : memref<1x8xf32, #tpu.memory_space<vmem>>, vector<1x8xf32>
    tpu.vector_store %arg5[%c0_14, %c0_15], %22 {strides = array<i32>} : memref<1x8xf32, #tpu.memory_space<vmem>>, vector<1x8xf32>,
    return
  }
  func.func @transform_0(%arg0: i32) -> (i32, i32) {
    %c0_i32 = arith.constant 0 : i32
    %c0_i32_0 = arith.constant 0 : i32
    return %c0_i32, %arg0 : i32, i32
  }
  func.func @transform_1(%arg0: i32) -> (i32, i32) {
    %c0_i32 = arith.constant 0 : i32
    %c0_i32_0 = arith.constant 0 : i32
    %c0_i32_1 = arith.constant 0 : i32
    return %c0_i32, %c0_i32_0 : i32, i32
  }
  func.func @transform_2(%arg0: i32) -> (i32, i32) {
    %c0_i32 = arith.constant 0 : i32
    %c0_i32_0 = arith.constant 0 : i32
    %c0_i32_1 = arith.constant 0 : i32
    return %c0_i32, %c0_i32_0 : i32, i32
  }
  func.func @transform_3(%arg0: i32) -> (i32, i32) {
    %c0_i32 = arith.constant 0 : i32
    %c0_i32_0 = arith.constant 0 : i32
    %c0_i32_1 = arith.constant 0 : i32
    return %c0_i32, %c0_i32_0 : i32, i32
  }
  func.func @transform_4(%arg0: i32) -> (i32, i32) {
    %c0_i32 = arith.constant 0 : i32
    %c0_i32_0 = arith.constant 0 : i32
    return %c0_i32, %arg0 : i32, i32
  }
}

</mosaic_0001>

<bundles_post_ra>
// kernel: tpu_custom_call.1
= control target key start
LH: loop header
LB: loop body
LE: loop exit
PB: predicated region body
PF: predicated region fallthrough
CT: control target
= control target key end

     0   :  { %vm50_vm0 = vcmask 187392   ;;  %vm63_vm1 = vcmask 1046528   ;;  %v432_v5 = vmov 0   ;;  %s536_s0 = inlined_call_operand.vmem [shape: f32[23,8], index: 0, kind: input, shape index: {}]   ;;  %s537_s1 = inlined_call_operand.vmem [shape: f32[32,23], index: 1, kind: input, shape index: {}]   ;;  %s538_s2 = inlined_call_operand.vmem [shape: f32[32,32], index: 2, kind: input, shape index: {}]   ;;  %s539_s3 = inlined_call_operand.vmem [shape: f32[32,4], index: 3, kind: input, shape index: {}]   ;;  %s540_s4 = inlined_call_operand.hbm [shape: f32[1,8], index: 4, kind: output, shape index: {}]  }
   0x1   :  { %v23_v0 = vld [vmem:[%s536_s0] sm:$0xff]  ;;  %v24_v1 = vld [vmem:[%s536_s0 + $0x8] sm:$0xff]  ;;  %v25_v4 = vld [vmem:[%s536_s0 + $0x10] sm:$0x7f]  ;;  %401 = vset.pattern.permute.xlu0 %v432_v5 }
   0x2   :  { %v384_v2 = vpack.c.bf16 %v24_v1, %v23_v0  ;;  %v26_v3 = vld [vmem:[%s537_s1] sm:$0xff]  ;;  %v20_v7 = vld [vmem:[%s539_s3 + $0x10] sm:$0xff] }
   0x3   :  { %364 = vmatprep.mubr.msk.f32.mxu0 %vm50_vm0, %v26_v3  ;;  %v18_v6 = vld [vmem:[%s539_s3] sm:$0xff] }
   0x4   :  { %385 = vmatprep.subr.bf16.mxu0 %v384_v2  ;;  %32 = vperm.xlu0 %401, %v18_v6  }
   0x5   :  { %9 = vsyncpa [#allocation3], 0  ;;  %387 = vmatpush3.bf16.msra.mxu0 %v384_v2  ;;  %402 = vset.pattern.permute.xlu1 %v432_v5  ;;  %v19_v8 = vld [vmem:[%s539_s3 + $0x8] sm:$0xff]  ;;  %v21_v10 = vld [vmem:[%s539_s3 + $0x18] sm:$0xff]  ;;  %vm176_vm2 = vcmask 261120   ;;  %v433_v14 = vmov 1  }
   0x6   :  { %362 = vmatprep.subr.msk.mxu0 %vm63_vm1, %v25_v4  ;;  %42 = vperm.xlu1 %402, %v20_v7   ;;  %v27_v9 = vld [vmem:[%s537_s1 + $0x8] sm:$0xff]  ;;  %v28_v11 = vld [vmem:[%s537_s1 + $0x10] sm:$0xff]  ;;  %v29_v12 = vld [vmem:[%s537_s1 + $0x18] sm:$0xff]  ;;  %v434_v15 = vmov 2   ;;  %v435_v17 = vmov 3   ;;  %vm298_vm3 = vcmask 64512  }
   0x7   :  { %v156_v13 = vld [vmem:[%s538_s2] sm:$0xff]  ;;  %v157_v36 = vld [vmem:[%s538_s2 + $0x8] sm:$0xff]  ;;  %v158_v37 = vld [vmem:[%s538_s2 + $0x10] sm:$0xff]  ;;  %vm318_vm4 = vcmask 57344  }
   0x8   :  { %37 = vperm.xlu0 %401, %v19_v8   ;;  %378 = vmatprep.mubr.msk.f32.mxu1 %vm176_vm2, %v156_v13  ;;  %v22_v16 = vld [vmem:[%s539_s3] sm:$0x1]  ;;  %v159_v38 = vld [vmem:[%s538_s2 + $0x18] sm:$0xff]  ;;  %s436_s2 = smov [#allocation2]  }
   0x9   :  { %363 = vmatpush3.msk.msra.mxu0 %vm63_vm1, %v25_v4  ;;  %s326_s18 = sshll.u32 %s436_s2, 4  ;;  %s327_s18 = int_to_ptr.vmem [resolvable:$true] %s326_s18 }
   0xa   :  { %365 = vmatmul.mubr.msk.f32.vlgmr.msra.gmra.mrb[0].mxu0 %vm50_vm0, %v27_v9  ;;  %47 = vperm.xlu1 %402, %v21_v10   ;;  %s408_s19 = scalar_lea.vmem %s327_s18, 16  ;;  %s412_s20 = scalar_lea.vmem %s327_s18, 32 }
   0xb   :  { %367 = vmatprep.mubr.msk.f32.mxu0 %vm50_vm0, %v28_v11  ;;  %p409_p0 = scmp.ne.s32.totalorder %s327_s18, %s408_s19  ;;  %p413_p1 = scmp.lt.s32.totalorder %s327_s18, %s327_s18 }
   0xc   :  { %403 = vset.pattern.permute.xlu0 %v433_v14  ;;  %p414_p2 = scmp.lt.s32.totalorder %s412_s20, %s408_s19 }
   0xd   :  { %161 = vperm.xlu0 %403, %v18_v6  }
   0xe   :  { %368 = vmatmul.mubr.msk.f32.gmra.mrb[2].mxu0 %vm50_vm0, %v29_v12  ;;  %404 = vset.pattern.permute.xlu1 %v433_v14  ;;  %p415_p3 = por %p414_p2, %p413_p1 }
   0xf   :  { %165 = vperm.xlu1 %404, %v19_v8  }
  0x10   :  { %p416_p4 = pnand %p415_p3, %p409_p0 }
  0x11   :  { %173 = vperm.xlu0 %403, %v21_v10  }
  0x13   :  { %169 = vperm.xlu1 %404, %v20_v7  }
  0x15   :  { %406 = vset.pattern.permute.xlu0 %v434_v15 }
  0x16   :  { %283 = vperm.xlu0 %406, %v19_v8  }
  0x17   :  { %405 = vset.pattern.permute.xlu1 %v434_v15 }
  0x18   :  { %279 = vperm.xlu1 %405, %v18_v6  }
  0x1a   :  { %407 = vset.pattern.permute.xlu0 %v435_v17 }
  0x1b   :  { %314 = vperm.xlu0 %407, %v22_v16  }
  0x1c   :  { %287 = vperm.xlu1 %405, %v20_v7  }
  0x20   :  { %291 = vperm.xlu1 %405, %v21_v10  }
  0x83   :  { %v33_v18 = vpop.permute.xlu0 %32 }
  0x85   :  { %v43_v19 = vpop.permute.xlu1 %42 }
  0x87   :  { %v38_v20 = vpop.permute.xlu0 %37 }
  0x89   :  { %v48_v27 = vpop.permute.xlu1 %47 }
  0x8c   :  { %v162_v41 = vpop.permute.xlu0 %161 }
  0x8e   :  { %v166_v39 = vpop.permute.xlu1 %165 }
  0x90   :  { %v174_v43 = vpop.permute.xlu0 %173 }
  0x92   :  { %v170_v40 = vpop.permute.xlu1 %169 }
  0x95   :  { %v284_v48 = vpop.permute.xlu0 %283 }
  0x97   :  { %v280_v42 = vpop.permute.xlu1 %279 }
  0x9a   :  { %v315_v11 = vpop.permute.xlu0 %314 }
  0x9b   :  { %v288_v49 = vpop.permute.xlu1 %287 }
  0x9f   :  { %v292_v62 = vpop.permute.xlu1 %291 }
  0xdd   :  { %v366_v21 = vpop.f32.mrb[0].mxu0 }
  0xde   :  { %v139_v22 = vadd.f32 %v366_v21, %v38_v20  ;;  %v133_v23 = vpop.f32.mrb[1].mxu0 }
  0xdf   :  { %v134_v24 = vadd.f32 %v133_v23, %v33_v18 }
  0xe0   :  { %v153_v25 = vmax.f32 %v139_v22, 0.0 }
  0xe1   :  { %v152_v26 = vmax.f32 %v134_v24, 0.0  ;;  %v369_v28 = vpop.f32.mrb[2].mxu0 }
  0xe2   :  { %v149_v29 = vadd.f32 %v369_v28, %v48_v27  ;;  %v143_v30 = vpop.f32.mrb[3].mxu0 }
  0xe3   :  { %v144_v31 = vadd.f32 %v143_v30, %v43_v19  ;;  %v388_v32 = vpack.c.bf16 %v153_v25, %v152_v26 }
  0xe4   :  { %v155_v33 = vmax.f32 %v149_v29, 0.0 }
  0xe5   :  { %v154_v34 = vmax.f32 %v144_v31, 0.0  ;;  %389 = vmatprep.subr.bf16.mxu1 %v388_v32 }
  0xe6   :  { %391 = vmatpush3.bf16.msra.mxu1 %v388_v32 }
  0xe7   :  { %v392_v35 = vpack.c.bf16 %v155_v33, %v154_v34 }
  0xe9   :  { %393 = vmatprep.subr.bf16.mxu1 %v392_v35 }
  0xea   :  { %395 = vmatpush3.bf16.msra.mxu1 %v392_v35 }
  0xed   :  { %379 = vmatmul.mubr.msk.f32.vlgmr.msra.gmra.mrb[0].mxu1 %vm176_vm2, %v157_v36 }
  0xee   :  { %381 = vmatprep.mubr.msk.f32.mxu1 %vm176_vm2, %v158_v37 }
  0xf1   :  { %382 = vmatmul.mubr.msk.f32.gmra.mrb[2].mxu1 %vm176_vm2, %v159_v38 }
 0x1c0   :  { %v380_v44 = vpop.f32.mrb[0].mxu1 }
 0x1c1   :  { %v261_v45 = vadd.f32 %v380_v44, %v166_v39  ;;  %v255_v46 = vpop.f32.mrb[1].mxu1 }
 0x1c2   :  { %v256_v47 = vadd.f32 %v255_v46, %v162_v41 }
 0x1c3   :  { %v275_v50 = vmax.f32 %v261_v45, 0.0 }
 0x1c4   :  { %v274_v51 = vmax.f32 %v256_v47, 0.0  ;;  %v383_v52 = vpop.f32.mrb[2].mxu1 }
 0x1c5   :  { %v271_v53 = vadd.f32 %v383_v52, %v174_v43  ;;  %v295_v54 = vmul.f32 %v284_v48, %v275_v50  ;;  %v265_v55 = vpop.f32.mrb[3].mxu1 }
 0x1c6   :  { %v294_v56 = vmul.f32 %v280_v42, %v274_v51  ;;  %v266_v57 = vadd.f32 %v265_v55, %v170_v40 }
 0x1c7   :  { %v277_v58 = vmax.f32 %v271_v53, 0.0  ;;  %v300_v59 = vsel %vm298_vm3, %v295_v54, 0.0 }
 0x1c8   :  { %v299_v60 = vsel %vm298_vm3, %v294_v56, 0.0  ;;  %v276_v61 = vmax.f32 %v266_v57, 0.0 }
 0x1c9   :  { %v301_v63 = vadd.f32 %v300_v59, %v299_v60  ;;  %v297_v0 = vmul.f32 %v292_v62, %v277_v58 }
 0x1ca   :  { %v296_v1 = vmul.f32 %v288_v49, %v276_v61 }
 0x1cb   :  { %v304_v4 = vsel %vm298_vm3, %v297_v0, 0.0 }
 0x1cc   :  { %v302_v2 = vsel %vm298_vm3, %v296_v1, 0.0 }
 0x1cd   :  { %v303_v3 = vadd.f32 %v302_v2, %v301_v63 }
 0x1cf   :  { %v305_v5 = vadd.f32 %v304_v4, %v303_v3 }
 0x1d1   :  { %v306_v6 = vrot.slane %v305_v5, 4 }
 0x1d3   :  { %v307_v7 = vadd.f32 %v306_v6, %v305_v5 }
 0x1d5   :  { %v308_v8 = vrot.slane %v307_v7, 2 }
 0x1d7   :  { %v309_v9 = vadd.f32 %v308_v8, %v307_v7 }
 0x1d9   :  { %v310_v10 = vrot.slane %v309_v9, 1 }
 0x1db   :  { %v311_v12 = vadd.f32 %v310_v10, %v309_v9 }
 0x1dd   :  { %v317_v13 = vadd.f32 %v315_v11, %v311_v12 }
 0x1df   :  { %319 = vst.msk [vmem:[#allocation2] sm:$0x1] %vm318_vm4, %v317_v13 }
 0x1e0   :  { %419 = shalt.err (!%p416_p4)
}
 0x1e1   :  { %s420_s23 = scalar_lea.hbm %s540_s4, 16 }
 0x1e2   :  { %p421_p5 = scmp.ne.s32.totalorder %s540_s4, %s420_s23  ;;  %p424_p6 = scmp.lt.u32.totalorder %s420_s23, %s540_s4 }
 0x1e4   :  { %p426_p7 = pnand %p424_p6, %p421_p5 }
 0x1e6   :  { %429 = shalt.err (!%p426_p7)
}
 0x1e7   :  { %329 = dma.vmem_to_hbm [thread:$0]  %s327_s18, 16, %s540_s4, [#allocation3]  }
 0x1e8   :  { %430 = dma.done.wait [#allocation3], 16  }
 0x1e9   :  { %431 = vsyncadd [#allocation3], 4294967280 }
 0x1ea   :  { %333 = vsyncpa [#allocation3], 1 }

</bundles_post_ra>
